<compile_context>
chip_gen: v5e
topology: v5e:2x2
jax: 0.10.0
libtpu: 0.0.40
codegen_flags: <defaults>
</compile_context>

<pallas_src>
import functools
import math

import numpy as np
import jax
import jax.numpy as jnp
from jax.experimental import pallas as pl
from jax.experimental.pallas import tpu as pltpu


def _cdiv(a, b):
    return (a + b - 1) // b


def _round_up(x, m):
    return ((x + m - 1) // m) * m


def _group_width(d):
    """Smallest multiple of both d and 128 whose group count (width // d) >= 128."""
    lcm = (d * 128) // math.gcd(d, 128)
    mult = _cdiv(128, lcm // d)
    return lcm * mult


def _pick_block_rows(n_chunks, target):
    """Largest tile that amortizes per-step overhead, keeping >=4 grid steps
    when possible (v7x has 2 TensorCores sharing the 'parallel' grid axis)."""
    if n_chunks <= 32:
        return n_chunks                       # tiny input: single step
    blk = min(target, n_chunks)
    if _cdiv(n_chunks, blk) < 4:
        blk = max(8, ((n_chunks // 4) // 8) * 8)
    return min(blk, n_chunks)


def _fsq_constants(levels, eps):
    lv = [float(l) for l in levels]
    half_l = [(l - 1.0) * (1.0 - eps) / 2.0 for l in lv]
    offset = [0.5 if int(l) % 2 == 0 else 0.0 for l in levels]
    # NOTE: the reference torch module uses tan(offset / half_l); levels must be >= 2.
    shift = [math.tan(o / h) for o, h in zip(offset, half_l)]
    half_w = [float(int(l) // 2) for l in levels]
    inv_half_w = [1.0 / w for w in half_w]
    basis = [1.0]
    for l in levels[:-1]:
        basis.append(basis[-1] * float(l))
    return half_l, offset, shift, half_w, inv_half_w, basis


def _make_basis_weight(levels, group_c):
    """Block-diagonal weight: W[g*D + j, g] = basis[j]; maps (blk, group_c) q-values
    to (blk, group_c//D) per-row basis dot-products on the MXU."""
    d = len(levels)
    g = group_c // d
    basis = np.cumprod([1] + list(levels[:-1])).astype(np.float32)
    w = np.zeros((group_c, g), np.float32)
    for gi in range(g):
        w[gi * d:(gi + 1) * d, gi] = basis
    return jnp.asarray(w)


def _make_fsq_kernel(levels, eps, group_c):
    d = len(levels)
    half_l, offset, shift, half_w, inv_half_w, basis = _fsq_constants(levels, eps)
    # Constant term of the index dot-product: sum_j half_width_j * basis_j.
    idx_offset = float(sum(h * b for h, b in zip(half_w, basis)))

    def lane_const(vals):
        # Per-element constant along the flattened axis (period d).  Collapses to
        # a scalar immediate when all levels are equal (default config); otherwise
        # a (1, group_c) vector.  group_c % d == 0 and every block starts at a
        # flat offset that is a multiple of group_c, so d == (lane position % d).
        vals = [float(v) for v in vals]
        if all(v == vals[0] for v in vals):
            return jnp.float32(vals[0])
        pos = jax.lax.broadcasted_iota(jnp.int32, (1, group_c), 1) % d
        out = jnp.full((1, group_c), vals[0], jnp.float32)
        for k in range(1, d):
            out = jnp.where(pos == k, jnp.float32(vals[k]), out)
        return out

    def kernel(z_ref, w_ref, codes_ref, idx_ref):
        # Hoist per-level constant vectors once per grid step (JAX does not CSE them).
        c_shift = lane_const(shift)
        c_half_l = lane_const(half_l)
        c_offset = lane_const(offset)
        c_inv_hw = lane_const(inv_half_w)

        z = z_ref[...]                                    # (blk, group_c) f32, lane-dense
        # bound(): tanh(z + shift) * half_l - offset      (EUP + VPU)
        zb = jnp.tanh(z + c_shift) * c_half_l - c_offset
        q = jnp.round(zb)                                 # integer-valued f32
        # quantize(): renormalize to [-1, 1] via reciprocal multiply (no divide).
        codes_ref[...] = (q * c_inv_hw).astype(codes_ref.dtype)
        # codes_to_indices(): per-row (q + half_w) . basis == q @ W + sum(half_w*basis).
        # One MXU matmul; exact in f32 (all operands are small exact integers).
        idx = jnp.dot(q, w_ref[...], preferred_element_type=jnp.float32)
        idx_ref[...] = (idx + idx_offset).astype(jnp.int32)

    return kernel


def fsq_forward(z, levels, eps=1e-3, block_chunk_rows=1024):
    """FSQ forward. z: (B, N, D) with D == len(levels). Returns (out, indices)."""
    B, N, D = z.shape
    assert D == len(levels), f"expected dimension of {len(levels)} but found {D}"
    rows = B * N

    group_c = _group_width(D)                 # 768 for D == 6
    g = group_c // D                          # data rows per chunk-row (128 for D == 6)

    flat = z.astype(jnp.float32).reshape(rows * D)        # free, natural memory order
    total = rows * D
    padded = _round_up(total, group_c)
    if padded != total:
        # Only misaligned inputs (rows % g != 0) pay this small pad/slice pass.
        flat = jnp.pad(flat, (0, padded - total))
    n_chunks = padded // group_c

    blk = _pick_block_rows(n_chunks, block_chunk_rows)
    grid = _cdiv(n_chunks, blk)

    zc = flat.reshape(n_chunks, group_c)
    w = _make_basis_weight(levels, group_c)
    kernel = _make_fsq_kernel(tuple(int(l) for l in levels), eps, group_c)

    # Double-buffered in/out tiles + resident basis weight, plus margin.
    vmem_need = 2 * (2 * blk * group_c * 4 + blk * g * 4) + 2 * group_c * g * 4
    vmem_limit = int(max(vmem_need + (8 << 20), 32 << 20))

    codes_c, idx_c = pl.pallas_call(
        kernel,
        out_shape=(
            jax.ShapeDtypeStruct((n_chunks, group_c), jnp.float32),
            jax.ShapeDtypeStruct((n_chunks, g), jnp.int32),
        ),
        grid=(grid,),
        in_specs=[
            pl.BlockSpec((blk, group_c), lambda i: (i, 0)),
            pl.BlockSpec((group_c, g), lambda i: (0, 0)),   # resident basis weight
        ],
        out_specs=(
            pl.BlockSpec((blk, group_c), lambda i: (i, 0)),
            pl.BlockSpec((blk, g), lambda i: (i, 0)),
        ),
        compiler_params=pltpu.CompilerParams(
            dimension_semantics=("parallel",),
            vmem_limit_bytes=vmem_limit,
        ),
    )(zc, w)

    codes_flat = codes_c.reshape(padded)
    idx_flat = idx_c.reshape(padded // D)
    if padded != total:
        codes_flat = codes_flat[:total]
        idx_flat = idx_flat[:rows]
    out = codes_flat.reshape(B, N, D)
    indices = idx_flat.reshape(B, N)          # keep_num_codebooks_dim=False -> squeezed
    return out, indices


def fsq_reference(z, levels, eps=1e-3):
    """Pure-JAX reference mirroring the PyTorch forward (for a correctness check)."""
    lv = jnp.asarray(levels, jnp.float32)
    half_l = (lv - 1.0) * (1.0 - eps) / 2.0
    offset = jnp.where(jnp.asarray(levels) % 2 == 0, 0.5, 0.0)
    shift = jnp.tan(offset / half_l)
    half_w = jnp.floor(lv / 2.0)
    basis = jnp.cumprod(jnp.asarray([1] + list(levels[:-1]), jnp.float32))
    z_b = jnp.tanh(z + shift) * half_l - offset
    q = jnp.round(z_b)
    codes = q / half_w
    idx = jnp.sum((q + half_w) * basis, axis=-1).astype(jnp.int32)
    return codes, idx


if __name__ == "__main__":
    levels = [4, 4, 4, 4, 4, 4]          # default FSQConfig
    B, N, D = 2, 8, len(levels)          # small shapes, d_input == 6 (Identity projections)

    key = jax.random.PRNGKey(0)
    z = jax.random.normal(key, (B, N, D), dtype=jnp.float32)

    fsq = jax.jit(functools.partial(fsq_forward, levels=levels))

    out, indices = fsq(z)
    out = jax.block_until_ready(out)
    indices = jax.block_until_ready(indices)

    ref_out, ref_idx = fsq_reference(z, levels)
    assert out.shape == (B, N, D) and out.dtype == jnp.float32
    assert indices.shape == (B, N) and indices.dtype == jnp.int32
    assert jnp.allclose(out, ref_out, atol=1e-5)
    assert jnp.array_equal(indices, ref_idx)

    # Also exercise the aligned (no-pad), multi-step-grid path.
    z2 = jax.random.normal(jax.random.PRNGKey(1), (2, 4096, D), dtype=jnp.float32)
    out2, idx2 = fsq(z2)
    out2 = jax.block_until_ready(out2)
    idx2 = jax.block_until_ready(idx2)
    ref_out2, ref_idx2 = fsq_reference(z2, levels)
    assert jnp.allclose(out2, ref_out2, atol=1e-5)
    assert jnp.array_equal(idx2, ref_idx2)

    print("KERNEL_OK")
</pallas_src>

<mosaic_0001>
module attributes {stable_mosaic.version = 11 : i64} {
  func.func @kernel(%arg0: i32, %arg1: memref<1x768xf32, #tpu.memory_space<vmem>>, %arg2: memref<768x128xf32, #tpu.memory_space<vmem>>, %arg3: memref<1x768xf32, #tpu.memory_space<vmem>>, %arg4: memref<1x128xi32, #tpu.memory_space<vmem>>) attributes {dimension_semantics = [#tpu.dimension_semantics<parallel>], iteration_bounds = array<i64: 1>, scalar_prefetch = 0 : i64, scratch_operands = 0 : i64, tpu.core_type = #tpu.core_type<tc>, window_params = [{transform_indices = @transform_0, window_bounds = array<i64: 1, 768>}, {pipeline_mode = #tpu.pipeline_mode<synchronous>, transform_indices = @transform_1, window_bounds = array<i64: 768, 128>}, {transform_indices = @transform_2, window_bounds = array<i64: 1, 768>}, {transform_indices = @transform_3, window_bounds = array<i64: 1, 128>}]} {
    %c0 = arith.constant 0 : index
    %c0_0 = arith.constant 0 : index
    %0 = vector.load %arg1[%c0, %c0_0] : memref<1x768xf32, #tpu.memory_space<vmem>>, vector<1x768xf32>
    %cst = arith.constant 0.346627265 : f32
    %1 = vector.broadcast %cst : f32 to vector<1x768xf32>
    %2 = arith.addf %0, %1 : vector<1x768xf32>
    %3 = math.tanh %2 : vector<1x768xf32>
    %cst_1 = arith.constant 1.498500e+00 : f32
    %4 = vector.broadcast %cst_1 : f32 to vector<1x768xf32>
    %5 = arith.mulf %3, %4 : vector<1x768xf32>
    %cst_2 = arith.constant 5.000000e-01 : f32
    %6 = vector.broadcast %cst_2 : f32 to vector<1x768xf32>
    %7 = arith.subf %5, %6 : vector<1x768xf32>
    %8 = math.roundeven %7 : vector<1x768xf32>
    %cst_3 = arith.constant 5.000000e-01 : f32
    %9 = vector.broadcast %cst_3 : f32 to vector<1x768xf32>
    %10 = arith.mulf %8, %9 : vector<1x768xf32>
    %c0_4 = arith.constant 0 : index
    %c0_5 = arith.constant 0 : index
    %11 = vector.load %arg3[%c0_4, %c0_5] : memref<1x768xf32, #tpu.memory_space<vmem>>, vector<1x768xf32>
    tpu.vector_store %arg3[%c0_4, %c0_5], %10 {strides = array<i32>} : memref<1x768xf32, #tpu.memory_space<vmem>>, vector<1x768xf32>,
    %c0_6 = arith.constant 0 : index
    %c0_7 = arith.constant 0 : index
    %12 = vector.load %arg2[%c0_6, %c0_7] : memref<768x128xf32, #tpu.memory_space<vmem>>, vector<768x128xf32>
    %cst_8 = arith.constant dense<0.000000e+00> : vector<1x128xf32>
    %13 = tpu.matmul %8, %12, %cst_8 {dimension_numbers = #tpu.dot_dimension_numbers<[1], [0], [0], [1], [0, 0, 1, 1], [], []>} : vector<1x768xf32>, vector<768x128xf32>, vector<1x128xf32> -> vector<1x128xf32>
    %cst_9 = arith.constant 2.730000e+03 : f32
    %14 = vector.broadcast %cst_9 : f32 to vector<1x128xf32>
    %15 = arith.addf %13, %14 : vector<1x128xf32>
    %16 = arith.fptosi %15 : vector<1x128xf32> to vector<1x128xi32>
    %c0_10 = arith.constant 0 : index
    %c0_11 = arith.constant 0 : index
    %17 = vector.load %arg4[%c0_10, %c0_11] : memref<1x128xi32, #tpu.memory_space<vmem>>, vector<1x128xi32>
    tpu.vector_store %arg4[%c0_10, %c0_11], %16 {strides = array<i32>} : memref<1x128xi32, #tpu.memory_space<vmem>>, vector<1x128xi32>,
    return
  }
  func.func @transform_0(%arg0: i32) -> (i32, i32) {
    %c0_i32 = arith.constant 0 : i32
    %c0_i32_0 = arith.constant 0 : i32
    return %arg0, %c0_i32 : i32, i32
  }
  func.func @transform_1(%arg0: i32) -> (i32, i32) {
    %c0_i32 = arith.constant 0 : i32
    %c0_i32_0 = arith.constant 0 : i32
    %c0_i32_1 = arith.constant 0 : i32
    return %c0_i32, %c0_i32_0 : i32, i32
  }
  func.func @transform_2(%arg0: i32) -> (i32, i32) {
    %c0_i32 = arith.constant 0 : i32
    %c0_i32_0 = arith.constant 0 : i32
    return %arg0, %c0_i32 : i32, i32
  }
  func.func @transform_3(%arg0: i32) -> (i32, i32) {
    %c0_i32 = arith.constant 0 : i32
    %c0_i32_0 = arith.constant 0 : i32
    return %arg0, %c0_i32 : i32, i32
  }
}

</mosaic_0001>

<bundles_post_ra>
// kernel: fsq_forward.1
= control target key start
LH: loop header
LB: loop body
LE: loop exit
PB: predicated region body
PF: predicated region fallthrough
CT: control target
= control target key end

     0   :  { %9 = vsyncpa [#allocation3], 0  ;;  %s326_s15 = smov [#allocation2]   ;;  %s327_s17 = smov 128   ;;  %s361_s0 = inlined_call_operand.vmem [shape: f32[1,768], index: 0, kind: input, shape index: {}]   ;;  %s362_s1 = inlined_call_operand.hbm [shape: f32[768,128], index: 1, kind: input, shape index: {}]   ;;  %s363_s2 = inlined_call_operand.vmem [shape: f32[1,768], index: 2, kind: output, shape index: {0}]   ;;  %s364_s3 = inlined_call_operand.vmem [shape: s32[1,128], index: 3, kind: output, shape index: {1}]  }
   0x1   :  { %s16_s14 = sshll.u32 %s362_s1, 4  ;;  %s18_s16 = sshll.u32 %s326_s15, 4  ;;  %s17_s14 = int_to_ptr.hbm [resolvable:$true] %s16_s14  ;;  %s19_s16 = int_to_ptr.vmem [resolvable:$true] %s18_s16 }
   0x2   :  { %s328_s18 = smov 8  }
   0x3   :  { %24 = dma.hbm_to_vmem [thread:$0]  %s17_s14, 12288, %s19_s16, [#allocation3], %s327_s17, %s327_s17, %s328_s18  }
   0x4   :  { %324 = dma.done.wait [#allocation3], 12288  }
   0x5   :  { %325 = vsyncadd [#allocation3], 4294955008  ;;  %v56_v0 = vld [vmem:[#allocation2 + $0x78] sm:$0xff]  ;;  %v55_v1 = vld [vmem:[#allocation2 + $0x70] sm:$0xff] }
   0x6   :  { %v72_v2 = vld [vmem:[#allocation2 + $0xf8] sm:$0xff]  ;;  %150 = vmatpush.msra.mxu0 %v56_v0  ;;  %v71_v3 = vld [vmem:[#allocation2 + $0xf0] sm:$0xff]  ;;  %v54_v4 = vld [vmem:[#allocation2 + $0x68] sm:$0xff] }
   0x7   :  { %170 = vmatpush.msra.mxu1 %v72_v2  ;;  %v70_v5 = vld [vmem:[#allocation2 + $0xe8] sm:$0xff]  ;;  %v53_v6 = vld [vmem:[#allocation2 + $0x60] sm:$0xff]  ;;  %v52_v8 = vld [vmem:[#allocation2 + $0x58] sm:$0xff] }
   0x8   :  { %151 = vmatpush.msra.mxu0 %v55_v1  ;;  %v69_v7 = vld [vmem:[#allocation2 + $0xe0] sm:$0xff]  ;;  %v68_v9 = vld [vmem:[#allocation2 + $0xd8] sm:$0xff]  ;;  %v51_v10 = vld [vmem:[#allocation2 + $0x50] sm:$0xff] }
   0x9   :  { %171 = vmatpush.msra.mxu1 %v71_v3  ;;  %v88_v11 = vld [vmem:[#allocation2 + $0x178] sm:$0xff]  ;;  %v67_v12 = vld [vmem:[#allocation2 + $0xd0] sm:$0xff]  ;;  %v86_v15 = vld [vmem:[#allocation2 + $0x168] sm:$0xff] }
   0xa   :  { %152 = vmatpush.msra.mxu0 %v54_v4  ;;  %190 = vmatpush.msra.mxu2 %v88_v11  ;;  %v87_v13 = vld [vmem:[#allocation2 + $0x170] sm:$0xff]  ;;  %v104_v14 = vld [vmem:[#allocation2 + $0x1f8] sm:$0xff]  ;;  %v50_v17 = vld [vmem:[#allocation2 + $0x48] sm:$0xff] }
   0xb   :  { %172 = vmatpush.msra.mxu1 %v70_v5  ;;  %v103_v16 = vld [vmem:[#allocation2 + $0x1f0] sm:$0xff]  ;;  %v66_v18 = vld [vmem:[#allocation2 + $0xc8] sm:$0xff]  ;;  %210 = vmatpush.msra.mxu3 %v104_v14  ;;  %v85_v19 = vld [vmem:[#allocation2 + $0x160] sm:$0xff] }
   0xc   :  { %153 = vmatpush.msra.mxu0 %v53_v6  ;;  %191 = vmatpush.msra.mxu2 %v87_v13  ;;  %v102_v20 = vld [vmem:[#allocation2 + $0x1e8] sm:$0xff]  ;;  %v49_v21 = vld [vmem:[#allocation2 + $0x40] sm:$0xff]  ;;  %v84_v23 = vld [vmem:[#allocation2 + $0x158] sm:$0xff] }
   0xd   :  { %173 = vmatpush.msra.mxu1 %v69_v7  ;;  %v65_v22 = vld [vmem:[#allocation2 + $0xc0] sm:$0xff]  ;;  %211 = vmatpush.msra.mxu3 %v103_v16  ;;  %v48_v25 = vld [vmem:[#allocation2 + $0x38] sm:$0xff]  ;;  %v83_v27 = vld [vmem:[#allocation2 + $0x150] sm:$0xff] }
   0xe   :  { %154 = vmatpush.msra.mxu0 %v52_v8  ;;  %192 = vmatpush.msra.mxu2 %v86_v15  ;;  %v101_v24 = vld [vmem:[#allocation2 + $0x1e0] sm:$0xff]  ;;  %v64_v26 = vld [vmem:[#allocation2 + $0xb8] sm:$0xff]  ;;  %v47_v29 = vld [vmem:[#allocation2 + $0x30] sm:$0xff] }
   0xf   :  { %174 = vmatpush.msra.mxu1 %v68_v9  ;;  %212 = vmatpush.msra.mxu3 %v102_v20  ;;  %v100_v28 = vld [vmem:[#allocation2 + $0x1d8] sm:$0xff]  ;;  %v63_v30 = vld [vmem:[#allocation2 + $0xb0] sm:$0xff]  ;;  %v82_v31 = vld [vmem:[#allocation2 + $0x148] sm:$0xff] }
  0x10   :  { %155 = vmatpush.msra.mxu0 %v51_v10  ;;  %193 = vmatpush.msra.mxu2 %v85_v19  ;;  %v99_v32 = vld [vmem:[#allocation2 + $0x1d0] sm:$0xff]  ;;  %v46_v33 = vld [vmem:[#allocation2 + $0x28] sm:$0xff]  ;;  %v81_v35 = vld [vmem:[#allocation2 + $0x140] sm:$0xff] }
  0x11   :  { %175 = vmatpush.msra.mxu1 %v67_v12  ;;  %213 = vmatpush.msra.mxu3 %v101_v24  ;;  %v62_v34 = vld [vmem:[#allocation2 + $0xa8] sm:$0xff]  ;;  %v45_v37 = vld [vmem:[#allocation2 + $0x20] sm:$0xff]  ;;  %v80_v39 = vld [vmem:[#allocation2 + $0x138] sm:$0xff] }
  0x12   :  { %156 = vmatpush.msra.mxu0 %v50_v17  ;;  %194 = vmatpush.msra.mxu2 %v84_v23  ;;  %v98_v36 = vld [vmem:[#allocation2 + $0x1c8] sm:$0xff]  ;;  %v61_v38 = vld [vmem:[#allocation2 + $0xa0] sm:$0xff]  ;;  %v44_v41 = vld [vmem:[#allocation2 + $0x18] sm:$0xff] }
  0x13   :  { %176 = vmatpush.msra.mxu1 %v66_v18  ;;  %214 = vmatpush.msra.mxu3 %v100_v28  ;;  %v97_v40 = vld [vmem:[#allocation2 + $0x1c0] sm:$0xff]  ;;  %v60_v42 = vld [vmem:[#allocation2 + $0x98] sm:$0xff]  ;;  %v79_v43 = vld [vmem:[#allocation2 + $0x130] sm:$0xff]  ;;  %v36_v28 = vlaneseq }
  0x14   :  { %157 = vmatpush.msra.mxu0 %v49_v21  ;;  %195 = vmatpush.msra.mxu2 %v83_v27  ;;  %v96_v44 = vld [vmem:[#allocation2 + $0x1b8] sm:$0xff]  ;;  %v43_v45 = vld [vmem:[#allocation2 + $0x10] sm:$0xff]  ;;  %v78_v47 = vld [vmem:[#allocation2 + $0x128] sm:$0xff] }
  0x15   :  { %177 = vmatpush.msra.mxu1 %v65_v22  ;;  %215 = vmatpush.msra.mxu3 %v99_v32  ;;  %v59_v46 = vld [vmem:[#allocation2 + $0x90] sm:$0xff]  ;;  %v42_v49 = vld [vmem:[#allocation2 + $0x8] sm:$0xff]  ;;  %v77_v51 = vld [vmem:[#allocation2 + $0x120] sm:$0xff]  ;;  %vm38_vm1 = vcmp.lt.s32.totalorder %v36_v28, 768 }
  0x16   :  { %158 = vmatpush.msra.mxu0 %v48_v25  ;;  %196 = vmatpush.msra.mxu2 %v82_v31  ;;  %v95_v48 = vld [vmem:[#allocation2 + $0x1b0] sm:$0xff]  ;;  %v58_v50 = vld [vmem:[#allocation2 + $0x88] sm:$0xff]  ;;  %v41_v53 = vld [vmem:[#allocation2] sm:$0xff] }
  0x17   :  { %178 = vmatpush.msra.mxu1 %v64_v26  ;;  %216 = vmatpush.msra.mxu3 %v98_v36  ;;  %v94_v52 = vld [vmem:[#allocation2 + $0x1a8] sm:$0xff]  ;;  %v57_v54 = vld [vmem:[#allocation2 + $0x80] sm:$0xff]  ;;  %v120_v56 = vld [vmem:[#allocation2 + $0x278] sm:$0xff] }
  0x18   :  { %159 = vmatpush.msra.mxu0 %v47_v29  ;;  %197 = vmatpush.msra.mxu2 %v81_v35  ;;  %v29_v55 = vld [vmem:[%s361_s0] sm:$0x3f]  ;;  %v136_v57 = vld [vmem:[#allocation2 + $0x2f8] sm:$0xff]  ;;  %v119_v61 = vld [vmem:[#allocation2 + $0x270] sm:$0xff] }
  0x19   :  { %179 = vmatpush.msra.mxu1 %v63_v30  ;;  %217 = vmatpush.msra.mxu3 %v97_v40  ;;  %v30_v58 = vadd.f32 0.34662727, %v29_v55  ;;  %v76_v59 = vld [vmem:[#allocation2 + $0x118] sm:$0xff]  ;;  %v93_v60 = vld [vmem:[#allocation2 + $0x1a0] sm:$0xff]  ;;  %v135_v62 = vld [vmem:[#allocation2 + $0x2f0] sm:$0xff] }
  0x1a   :  { %160 = vmatpush.msra.mxu0 %v46_v33  ;;  %198 = vmatpush.msra.mxu2 %v80_v39  ;;  %v75_v63 = vld [vmem:[#allocation2 + $0x110] sm:$0xff]  ;;  %v92_v0 = vld [vmem:[#allocation2 + $0x198] sm:$0xff]  ;;  %v118_v1 = vld [vmem:[#allocation2 + $0x268] sm:$0xff] }
  0x1b   :  { %180 = vmatpush.msra.mxu1 %v62_v34  ;;  %218 = vmatpush.msra.mxu3 %v96_v44  ;;  %298 = vtanh.f32 %v30_v58  ;;  %v134_v2 = vld [vmem:[#allocation2 + $0x2e8] sm:$0xff]  ;;  %v91_v4 = vld [vmem:[#allocation2 + $0x190] sm:$0xff]  ;;  %v117_v5 = vld [vmem:[#allocation2 + $0x260] sm:$0xff] }
  0x1c   :  { %161 = vmatpush.msra.mxu0 %v45_v37  ;;  %199 = vmatpush.msra.mxu2 %v79_v43  ;;  %v74_v3 = vld [vmem:[#allocation2 + $0x108] sm:$0xff]  ;;  %v133_v6 = vld [vmem:[#allocation2 + $0x2e0] sm:$0xff]  ;;  %v116_v10 = vld [vmem:[#allocation2 + $0x258] sm:$0xff] }
  0x1d   :  { %181 = vmatpush.msra.mxu1 %v61_v38  ;;  %219 = vmatpush.msra.mxu3 %v95_v48  ;;  %v73_v7 = vld [vmem:[#allocation2 + $0x100] sm:$0xff]  ;;  %v90_v8 = vld [vmem:[#allocation2 + $0x188] sm:$0xff]  ;;  %v132_v11 = vld [vmem:[#allocation2 + $0x2d8] sm:$0xff] }
  0x1e   :  { %162 = vmatpush.msra.mxu0 %v44_v41  ;;  %200 = vmatpush.msra.mxu2 %v78_v47  ;;  %v89_v13 = vld [vmem:[#allocation2 + $0x180] sm:$0xff]  ;;  %v115_v14 = vld [vmem:[#allocation2 + $0x250] sm:$0xff]  ;;  %v114_v17 = vld [vmem:[#allocation2 + $0x248] sm:$0xff] }
  0x1f   :  { %182 = vmatpush.msra.mxu1 %v60_v42  ;;  %220 = vmatpush.msra.mxu3 %v94_v52  ;;  %v131_v15 = vld [vmem:[#allocation2 + $0x2d0] sm:$0xff]  ;;  %v130_v18 = vld [vmem:[#allocation2 + $0x2c8] sm:$0xff]  ;;  %v113_v20 = vld [vmem:[#allocation2 + $0x240] sm:$0xff] }
  0x20   :  { %163 = vmatpush.msra.mxu0 %v43_v45  ;;  %201 = vmatpush.msra.mxu2 %v77_v51  ;;  %v129_v21 = vld [vmem:[#allocation2 + $0x2c0] sm:$0xff]  ;;  %v112_v25 = vld [vmem:[#allocation2 + $0x238] sm:$0xff]  ;;  %v111_v29 = vld [vmem:[#allocation2 + $0x230] sm:$0xff] }
  0x21   :  { %183 = vmatpush.msra.mxu1 %v59_v46  ;;  %221 = vmatpush.msra.mxu3 %v93_v60  ;;  %v299_v9 = vpop.eup %298  ;;  %v128_v26 = vld [vmem:[#allocation2 + $0x2b8] sm:$0xff]  ;;  %v127_v30 = vld [vmem:[#allocation2 + $0x2b0] sm:$0xff]  ;;  %v110_v32 = vld [vmem:[#allocation2 + $0x228] sm:$0xff] }
  0x22   :  { %164 = vmatpush.msra.mxu0 %v42_v49  ;;  %202 = vmatpush.msra.mxu2 %v76_v59  ;;  %v32_v12 = vmul.f32 1.4985, %v299_v9  ;;  %v126_v33 = vld [vmem:[#allocation2 + $0x2a8] sm:$0xff]  ;;  %v109_v37 = vld [vmem:[#allocation2 + $0x220] sm:$0xff]  ;;  %v108_v42 = vld [vmem:[#allocation2 + $0x218] sm:$0xff] }
  0x23   :  { %184 = vmatpush.msra.mxu1 %v58_v50  ;;  %222 = vmatpush.msra.mxu3 %v92_v0  ;;  %v125_v40 = vld [vmem:[#allocation2 + $0x2a0] sm:$0xff]  ;;  %v124_v43 = vld [vmem:[#allocation2 + $0x298] sm:$0xff]  ;;  %v107_v44 = vld [vmem:[#allocation2 + $0x210] sm:$0xff] }
  0x24   :  { %165 = vmatpush.msra.mxu0 %v41_v53  ;;  %203 = vmatpush.msra.mxu2 %v75_v63  ;;  %v281_v16 = vadd.f32 -0.5, %v32_v12  ;;  %v123_v45 = vld [vmem:[#allocation2 + $0x290] sm:$0xff]  ;;  %v106_v46 = vld [vmem:[#allocation2 + $0x208] sm:$0xff]  ;;  %v105_v48 = vld [vmem:[#allocation2 + $0x200] sm:$0xff] }
  0x25   :  { %185 = vmatpush.msra.mxu1 %v57_v54  ;;  %223 = vmatpush.msra.mxu3 %v91_v4  ;;  %v122_v47 = vld [vmem:[#allocation2 + $0x288] sm:$0xff]  ;;  %v121_v50 = vld [vmem:[#allocation2 + $0x280] sm:$0xff] }
  0x26   :  { %230 = vmatpush.msrb.mxu0 %v120_v56  ;;  %204 = vmatpush.msra.mxu2 %v74_v3  ;;  %v284_v19 = vcvt.f32.s32 %v281_v16  ;;  %v282_v22 = vand.u32 2147483647, %v281_v16  ;;  %v287_v24 = vand.u32 2147483648, %v281_v16 }
  0x27   :  { %250 = vmatpush.msrb.mxu1 %v136_v57  ;;  %224 = vmatpush.msra.mxu3 %v90_v8 }
  0x28   :  { %231 = vmatpush.msrb.mxu0 %v119_v61  ;;  %205 = vmatpush.msra.mxu2 %v73_v7  ;;  %v285_v23 = vcvt.s32.f32 %v284_v19  ;;  %vm283_vm0 = vcmp.lt.f32.partialorder %v282_v22, 8388608.0 }
  0x29   :  { %251 = vmatpush.msrb.mxu1 %v135_v62  ;;  %225 = vmatpush.msra.mxu3 %v89_v13 }
  0x2a   :  { %232 = vmatpush.msrb.mxu0 %v118_v1  ;;  %v286_v27 = vand.u32 2147483647, %v285_v23 }
  0x2b   :  { %252 = vmatpush.msrb.mxu1 %v134_v2 }
  0x2c   :  { %233 = vmatpush.msrb.mxu0 %v117_v5  ;;  %v288_v31 = vor.u32 %v287_v24, %v286_v27 }
  0x2d   :  { %253 = vmatpush.msrb.mxu1 %v133_v6 }
  0x2e   :  { %234 = vmatpush.msrb.mxu0 %v116_v10  ;;  %v289_v34 = vsel %vm283_vm0, %v288_v31, %v281_v16 }
  0x2f   :  { %254 = vmatpush.msrb.mxu1 %v132_v11  ;;  %v35_v35 = vmul.f32 0.5, %v289_v34  ;;  %v140_v36 = vperm.slane %v289_v34, 2  ;;  %v138_v38 = vperm.slane %v289_v34, 0  ;;  %v141_v39 = vperm.slane %v289_v34, 3 }
  0x30   :  { %235 = vmatpush.msrb.mxu0 %v115_v14  ;;  %v139_v41 = vperm.slane %v289_v34, 1  ;;  %v142_v49 = vperm.slane %v289_v34, 4  ;;  %v143_v51 = vperm.slane %v289_v34, 5 }
  0x31   :  { %255 = vmatpush.msrb.mxu1 %v131_v15  ;;  %40 = vst.msk [vmem:[%s363_s2] sm:$0x3f] %vm38_vm1, %v35_v35  ;;  %206 = vmatmul.f32.vlgmr.msra.gmra.mxu2 %v140_v36 }
  0x32   :  { %236 = vmatpush.msrb.mxu0 %v114_v17  ;;  %226 = vmatmul.f32.vlgmr.msra.gmra.mxu3 %v141_v39 }
  0x33   :  { %256 = vmatpush.msrb.mxu1 %v130_v18  ;;  %166 = vmatmul.f32.vlgmr.msra.gmra.mxu0 %v138_v38 }
  0x34   :  { %237 = vmatpush.msrb.mxu0 %v113_v20  ;;  %186 = vmatmul.f32.vlgmr.msra.gmra.mxu1 %v139_v41 }
  0x35   :  { %257 = vmatpush.msrb.mxu1 %v129_v21 }
  0x36   :  { %238 = vmatpush.msrb.mxu0 %v112_v25 }
  0x37   :  { %258 = vmatpush.msrb.mxu1 %v128_v26 }
  0x38   :  { %239 = vmatpush.msrb.mxu0 %v111_v29 }
  0x39   :  { %259 = vmatpush.msrb.mxu1 %v127_v30 }
  0x3a   :  { %240 = vmatpush.msrb.mxu0 %v110_v32 }
  0x3b   :  { %260 = vmatpush.msrb.mxu1 %v126_v33 }
  0x3c   :  { %241 = vmatpush.msrb.mxu0 %v109_v37 }
  0x3d   :  { %261 = vmatpush.msrb.mxu1 %v125_v40 }
  0x3e   :  { %242 = vmatpush.msrb.mxu0 %v108_v42 }
  0x3f   :  { %262 = vmatpush.msrb.mxu1 %v124_v43 }
  0x40   :  { %243 = vmatpush.msrb.mxu0 %v107_v44 }
  0x41   :  { %263 = vmatpush.msrb.mxu1 %v123_v45 }
  0x42   :  { %244 = vmatpush.msrb.mxu0 %v106_v46 }
  0x43   :  { %264 = vmatpush.msrb.mxu1 %v122_v47 }
  0x44   :  { %245 = vmatpush.msrb.mxu0 %v105_v48 }
  0x45   :  { %246 = vmatmul.f32.vlgmr.msrb.gmra.mxu0 %v142_v49  ;;  %265 = vmatpush.msrb.mxu1 %v121_v50 }
  0x46   :  { %266 = vmatmul.f32.vlgmr.msrb.gmra.mxu1 %v143_v51 }
  0xb0   :  { %v167_v52 = vpop.f32.mrf.mxu0 }
  0xb1   :  { %v168_v53 = vadd.f32 2730.0, %v167_v52  ;;  %v187_v54 = vpop.f32.mrf.mxu1 }
  0xb3   :  { %v188_v55 = vadd.f32 %v187_v54, %v168_v53 }
  0xb4   :  { %v207_v56 = vpop.f32.mrf.mxu2 }
  0xb5   :  { %v208_v57 = vadd.f32 %v207_v56, %v188_v55  ;;  %v227_v58 = vpop.f32.mrf.mxu3 }
  0xb7   :  { %v228_v59 = vadd.f32 %v227_v58, %v208_v57 }
  0xc2   :  { %v247_v60 = vpop.f32.mrf.mxu0 }
  0xc3   :  { %v248_v61 = vadd.f32 %v247_v60, %v228_v59  ;;  %v267_v62 = vpop.f32.mrf.mxu1 }
  0xc5   :  { %v268_v63 = vadd.f32 %v267_v62, %v248_v61 }
  0xc7   :  { %vm290_vm2 = vcmp.lt.s32.totalorder %v268_v63, 0  ;;  %v291_v0 = vceil.f32 %v268_v63  ;;  %v292_v1 = vfloor.f32 %v268_v63 }
  0xc9   :  { %v293_v2 = vsel %vm290_vm2, %v291_v0, %v292_v1 }
  0xca   :  { %v294_v3 = vcvt.f32.s32 %v293_v2 }
  0xcc   :  { %271 = vst [vmem:[%s364_s3] sm:$0x1] %v294_v3 }
  0xcd   :  { %280 = vsyncpa [#allocation3], 1 }

</bundles_post_ra>
